<compile_context>
chip_gen: v7x
topology: tpu7x:2x2x1
jax: 0.10.0
libtpu: 0.0.40
codegen_flags: <defaults>
</compile_context>

<pallas_src>
import math

import jax
import jax.numpy as jnp
from jax.experimental import pallas as pl
from jax.experimental.pallas import tpu as pltpu

HALF_LOG_2PI = 0.5 * math.log(2.0 * math.pi)


def _round_up(x, m):
    return (x + m - 1) // m * m


def _make_pmf_kernel(sigma):
    """Bake the fixed likelihood-noise scalar into the kernel as constants."""
    neg_inv_2s2 = -0.5 / (sigma * sigma)
    c_lik = math.log(sigma) + HALF_LOG_2PI

    def kernel(mat_ref, u_ref, vt_ref, lik_ref, uu_ref):
        u = u_ref[...]        # (tn, D)   row tile of U
        vt = vt_ref[...]      # (D, M)    resident, pre-transposed V
        mat = mat_ref[...]    # (tn, M)   row tile of the rating matrix

        # predicted = sigmoid(U @ V^T)   (MXU matmul, f32 accumulation; EUP sigmoid)
        scores = jnp.dot(u, vt, preferred_element_type=jnp.float32)
        predicted = jax.nn.sigmoid(scores)

        # Masked Normal(predicted, sigma).log_prob(matrix).  Padded rows have
        # matrix == -1 everywhere, so the mask zeroes them out exactly.
        diff = mat - predicted
        ll = diff * diff * neg_inv_2s2 - c_lik
        masked = jnp.where(mat != -1.0, ll, 0.0)          # (tn, M)

        # Fold the row tile into an (8, M) partial with pure VPU adds: the
        # reshape splits rows exactly at the (8, 128) sublane-tile boundary.
        tn, M = masked.shape
        lik_ref[0] = jnp.sum(masked.reshape(tn // 8, 8, M), axis=0)

        # U prior: accumulate only sum(u*u); constants are added in the
        # wrapper with the TRUE (unpadded) N (padded rows are zero).
        uu = u * u                                        # (tn, D)
        _, D = uu.shape
        uu_ref[0] = jnp.sum(uu.reshape(tn // 8, 8, D), axis=0)

    return kernel


def pmf_forward_pallas(matrix, u_features, v_features, sigma, sigma_u, sigma_v,
                       *, tn=256):
    """PMF log-joint, identical semantics to the PyTorch PMF.forward."""
    N, M = matrix.shape
    Nu, D = u_features.shape
    Mv, Dv = v_features.shape
    assert N == Nu and M == Mv and D == Dv

    sigma = float(sigma)
    sigma_u = float(sigma_u)
    sigma_v = float(sigma_v)

    matrix = matrix.astype(jnp.float32)
    u = u_features.astype(jnp.float32)
    v = v_features.astype(jnp.float32)

    # Row-tile size: large (MXU / DMA friendly) but clamped for tiny problems;
    # remainder handled by padding instead of asserting N % tn == 0.
    tn = max(8, min(tn, _round_up(N, 8)))
    n_pad = _round_up(N, tn)
    if n_pad != N:
        matrix = jnp.pad(matrix, ((0, n_pad - N), (0, 0)), constant_values=-1.0)
        u = jnp.pad(u, ((0, n_pad - N), (0, 0)))
    grid_n = n_pad // tn

    # Transpose V once in the wrapper; the kernel consumes the (D, M) form
    # directly on the MXU (no per-step transpose / XLU work).
    vt = jnp.transpose(v)                                   # (D, M)

    kernel = _make_pmf_kernel(sigma)

    lik_part, uu_part = pl.pallas_call(
        kernel,
        out_shape=(
            jax.ShapeDtypeStruct((grid_n, 8, M), jnp.float32),
            jax.ShapeDtypeStruct((grid_n, 8, D), jnp.float32),
        ),
        grid_spec=pltpu.PrefetchScalarGridSpec(
            num_scalar_prefetch=0,
            grid=(grid_n,),
            in_specs=[
                pl.BlockSpec((tn, M), lambda i: (i, 0)),    # matrix row tile
                pl.BlockSpec((tn, D), lambda i: (i, 0)),    # U row tile
                pl.BlockSpec((D, M), lambda i: (0, 0)),     # V^T (resident)
            ],
            out_specs=[
                pl.BlockSpec((1, 8, M), lambda i: (i, 0, 0)),
                pl.BlockSpec((1, 8, D), lambda i: (i, 0, 0)),
            ],
        ),
        compiler_params=pltpu.CompilerParams(
            dimension_semantics=("parallel",),              # both TCs on v7x
            vmem_limit_bytes=48 * 1024 * 1024,              # safe on v5e/v6e/v7x
        ),
    )(matrix, u, vt)

    # Tiny epilogue: final reductions + constant prior terms (true N, M, D).
    total_llh = jnp.sum(lik_part)
    sum_uu = jnp.sum(uu_part)
    sum_vv = jnp.sum(v * v)

    logp_u = -sum_uu * (0.5 / (sigma_u * sigma_u)) \
        - N * D * (math.log(sigma_u) + HALF_LOG_2PI)
    logp_v = -sum_vv * (0.5 / (sigma_v * sigma_v)) \
        - M * D * (math.log(sigma_v) + HALF_LOG_2PI)
    # HalfNormal(100).log_prob(sigma) for sigma >= 0.
    logp_sig = (0.5 * math.log(2.0 / math.pi) - math.log(100.0)
                - (sigma * sigma) / (2.0 * 100.0 * 100.0))

    return total_llh + logp_u + logp_v + logp_sig


def pmf_forward_ref(matrix, u_features, v_features, sigma, sigma_u, sigma_v):
    """Pure-JAX reference mirroring the PyTorch module."""
    predicted = jax.nn.sigmoid(u_features @ v_features.T)

    def normal_logprob(x, mu, s):
        return -((x - mu) ** 2) / (2.0 * s * s) - jnp.log(s) - HALF_LOG_2PI

    log_lik = normal_logprob(matrix, predicted, sigma)
    mask = (matrix != -1.0).astype(jnp.float32)
    total_llh = jnp.sum(log_lik * mask)
    logp_u = jnp.sum(normal_logprob(u_features, 0.0, sigma_u))
    logp_v = jnp.sum(normal_logprob(v_features, 0.0, sigma_v))
    logp_sig = (0.5 * jnp.log(2.0 / jnp.pi) - jnp.log(100.0)
                - (sigma * sigma) / (2.0 * 100.0 * 100.0))
    return total_llh + logp_u + logp_v + logp_sig


if __name__ == "__main__":
    key = jax.random.PRNGKey(0)
    k_mat, k_miss, k_u, k_v = jax.random.split(key, 4)

    N, M, D = 16, 16, 8  # small shapes: users x items, latent dim

    # Deterministic synthetic rating matrix with missing entries marked -1.
    ratings = jax.random.randint(k_mat, (N, M), 1, 6).astype(jnp.float32)
    missing = jax.random.bernoulli(k_miss, 0.3, (N, M))
    rating_mat = jnp.where(missing, -1.0, ratings)

    # sigma_u = sigma_v = rating_mat.var()  (torch .var() is unbiased, ddof=1)
    rating_var = float(jnp.var(rating_mat, ddof=1))
    sigma = 1.0            # self.sigma initialized to 1.0 in the module
    sigma_u = rating_var
    sigma_v = rating_var

    u_features = jax.random.normal(k_u, (N, D), dtype=jnp.float32)
    v_features = jax.random.normal(k_v, (M, D), dtype=jnp.float32)

    out = pmf_forward_pallas(rating_mat, u_features, v_features,
                             sigma, sigma_u, sigma_v, tn=256)
    out = jax.block_until_ready(out)

    ref = pmf_forward_ref(rating_mat, u_features, v_features,
                          sigma, sigma_u, sigma_v)
    assert jnp.allclose(out, ref, rtol=1e-4, atol=1e-4), (out, ref)

    print("KERNEL_OK")
</pallas_src>

<mosaic_0001>
module attributes {stable_mosaic.version = 11 : i64} {
  func.func @kernel(%arg0: i32, %arg1: memref<16x16xf32, #tpu.memory_space<vmem>>, %arg2: memref<16x8xf32, #tpu.memory_space<vmem>>, %arg3: memref<8x16xf32, #tpu.memory_space<vmem>>, %arg4: memref<1x8x16xf32, #tpu.memory_space<vmem>>, %arg5: memref<1x8x8xf32, #tpu.memory_space<vmem>>) attributes {dimension_semantics = [#tpu.dimension_semantics<parallel>], iteration_bounds = array<i64: 1>, scalar_prefetch = 0 : i64, scratch_operands = 0 : i64, tpu.core_type = #tpu.core_type<tc>, window_params = [{transform_indices = @transform_0, window_bounds = array<i64: 16, 16>}, {transform_indices = @transform_1, window_bounds = array<i64: 16, 8>}, {pipeline_mode = #tpu.pipeline_mode<synchronous>, transform_indices = @transform_2, window_bounds = array<i64: 8, 16>}, {transform_indices = @transform_3, window_bounds = array<i64: 1, 8, 16>}, {transform_indices = @transform_4, window_bounds = array<i64: 1, 8, 8>}]} {
    %c0 = arith.constant 0 : index
    %c0_0 = arith.constant 0 : index
    %0 = vector.load %arg2[%c0, %c0_0] : memref<16x8xf32, #tpu.memory_space<vmem>>, vector<16x8xf32>
    %c0_1 = arith.constant 0 : index
    %c0_2 = arith.constant 0 : index
    %1 = vector.load %arg3[%c0_1, %c0_2] : memref<8x16xf32, #tpu.memory_space<vmem>>, vector<8x16xf32>
    %c0_3 = arith.constant 0 : index
    %c0_4 = arith.constant 0 : index
    %2 = vector.load %arg1[%c0_3, %c0_4] : memref<16x16xf32, #tpu.memory_space<vmem>>, vector<16x16xf32>
    %cst = arith.constant dense<0.000000e+00> : vector<16x16xf32>
    %3 = tpu.matmul %0, %1, %cst {dimension_numbers = #tpu.dot_dimension_numbers<[1], [0], [0], [1], [0, 0, 1, 1], [], []>} : vector<16x8xf32>, vector<8x16xf32>, vector<16x16xf32> -> vector<16x16xf32>
    %4 = arith.negf %3 : vector<16x16xf32>
    %5 = math.exp %4 : vector<16x16xf32>
    %cst_5 = arith.constant 1.000000e+00 : f32
    %6 = vector.broadcast %cst_5 : f32 to vector<16x16xf32>
    %7 = arith.addf %6, %5 : vector<16x16xf32>
    %8 = arith.divf %6, %7 : vector<16x16xf32>
    %9 = arith.subf %2, %8 : vector<16x16xf32>
    %10 = arith.mulf %9, %9 : vector<16x16xf32>
    %cst_6 = arith.constant -5.000000e-01 : f32
    %11 = vector.broadcast %cst_6 : f32 to vector<16x16xf32>
    %12 = arith.mulf %10, %11 : vector<16x16xf32>
    %cst_7 = arith.constant 0.918938517 : f32
    %13 = vector.broadcast %cst_7 : f32 to vector<16x16xf32>
    %14 = arith.subf %12, %13 : vector<16x16xf32>
    %cst_8 = arith.constant -1.000000e+00 : f32
    %15 = vector.broadcast %cst_8 : f32 to vector<16x16xf32>
    %16 = arith.cmpf one, %2, %15 : vector<16x16xf32>
    %cst_9 = arith.constant 0.000000e+00 : f32
    %17 = vector.broadcast %cst_9 : f32 to vector<16x16xf32>
    %18 = arith.select %16, %14, %17 : vector<16x16xi1>, vector<16x16xf32>
    %19 = vector.shape_cast %18 : vector<16x16xf32> to vector<2x8x16xf32>
    %cst_10 = arith.constant dense<0.000000e+00> : vector<8x16xf32>
    %20 = vector.multi_reduction <add>, %19, %cst_10 [0] : vector<2x8x16xf32> to vector<8x16xf32>
    %c0_11 = arith.constant 0 : index
    %c0_12 = arith.constant 0 : index
    %c0_13 = arith.constant 0 : index
    %21 = vector.load %arg4[%c0_11, %c0_12, %c0_13] : memref<1x8x16xf32, #tpu.memory_space<vmem>>, vector<1x8x16xf32>
    %22 = vector.shape_cast %21 : vector<1x8x16xf32> to vector<8x16xf32>
    %23 = vector.shape_cast %20 : vector<8x16xf32> to vector<1x8x16xf32>
    tpu.vector_store %arg4[%c0_11, %c0_12, %c0_13], %23 {strides = array<i32>} : memref<1x8x16xf32, #tpu.memory_space<vmem>>, vector<1x8x16xf32>,
    %24 = arith.mulf %0, %0 : vector<16x8xf32>
    %25 = vector.shape_cast %24 : vector<16x8xf32> to vector<2x8x8xf32>
    %cst_14 = arith.constant dense<0.000000e+00> : vector<8x8xf32>
    %26 = vector.multi_reduction <add>, %25, %cst_14 [0] : vector<2x8x8xf32> to vector<8x8xf32>
    %c0_15 = arith.constant 0 : index
    %c0_16 = arith.constant 0 : index
    %c0_17 = arith.constant 0 : index
    %27 = vector.load %arg5[%c0_15, %c0_16, %c0_17] : memref<1x8x8xf32, #tpu.memory_space<vmem>>, vector<1x8x8xf32>
    %28 = vector.shape_cast %27 : vector<1x8x8xf32> to vector<8x8xf32>
    %29 = vector.shape_cast %26 : vector<8x8xf32> to vector<1x8x8xf32>
    tpu.vector_store %arg5[%c0_15, %c0_16, %c0_17], %29 {strides = array<i32>} : memref<1x8x8xf32, #tpu.memory_space<vmem>>, vector<1x8x8xf32>,
    return
  }
  func.func @transform_0(%arg0: i32) -> (i32, i32) {
    %c0_i32 = arith.constant 0 : i32
    %c0_i32_0 = arith.constant 0 : i32
    return %arg0, %c0_i32 : i32, i32
  }
  func.func @transform_1(%arg0: i32) -> (i32, i32) {
    %c0_i32 = arith.constant 0 : i32
    %c0_i32_0 = arith.constant 0 : i32
    return %arg0, %c0_i32 : i32, i32
  }
  func.func @transform_2(%arg0: i32) -> (i32, i32) {
    %c0_i32 = arith.constant 0 : i32
    %c0_i32_0 = arith.constant 0 : i32
    %c0_i32_1 = arith.constant 0 : i32
    return %c0_i32, %c0_i32_0 : i32, i32
  }
  func.func @transform_3(%arg0: i32) -> (i32, i32, i32) {
    %c0_i32 = arith.constant 0 : i32
    %c0_i32_0 = arith.constant 0 : i32
    %c0_i32_1 = arith.constant 0 : i32
    return %arg0, %c0_i32, %c0_i32_0 : i32, i32, i32
  }
  func.func @transform_4(%arg0: i32) -> (i32, i32, i32) {
    %c0_i32 = arith.constant 0 : i32
    %c0_i32_0 = arith.constant 0 : i32
    %c0_i32_1 = arith.constant 0 : i32
    return %arg0, %c0_i32, %c0_i32_0 : i32, i32, i32
  }
}

</mosaic_0001>

<bundles_post_ra>
// kernel: tpu_custom_call.1
= control target key start
LH: loop header
LB: loop body
LE: loop exit
PB: predicated region body
PF: predicated region fallthrough
CT: control target
= control target key end

     0   :  { %10 = vsyncpa [#allocation3], 0  ;;  %vm23_vm0 = vcmask 64512   ;;  %s306_s0 = inlined_call_operand.vmem [shape: f32[16,16], index: 0, kind: input, shape index: {}]   ;;  %s307_s1 = inlined_call_operand.vmem [shape: f32[16,8], index: 1, kind: input, shape index: {}]   ;;  %s308_s2 = inlined_call_operand.vmem [shape: f32[8,16], index: 2, kind: input, shape index: {}]   ;;  %s309_s3 = inlined_call_operand.hbm [shape: f32[1,8,16], index: 3, kind: output, shape index: {0}]   ;;  %s310_s4 = inlined_call_operand.hbm [shape: f32[1,8,8], index: 4, kind: output, shape index: {1}]  }
   0x1   :  { %v20_v0 = vld [vmem:[%s308_s2] sm:$0xff]  ;;  %v19_v2 = vld [vmem:[%s307_s1 + $0x8] sm:$0xff] }
   0x2   :  { %v18_v1 = vld [vmem:[%s307_s1] sm:$0xff]  ;;  %177 = vmatprep.subr.mxu0 %v20_v0 }
   0x3   :  { %179 = vmatprep.mubr.msk.f32.mxu0 %vm23_vm0, %v18_v1 }
   0x4   :  { %11 = vsyncpa [#allocation5], 0  ;;  %178 = vmatpush3.msra.mxu0 %v20_v0  ;;  %v134_v3 = vmul.f32 %v18_v1, %v18_v1  ;;  %v135_v4 = vmul.f32 %v19_v2, %v19_v2  ;;  %s240_s2 = smov [#allocation4]  }
   0x5   :  { %180 = vmatmul.mubr.msk.f32.vlgmr.msra.gmra.mrb[0].mxu0 %vm23_vm0, %v19_v2  ;;  %s156_s21 = sshll.u32 %s240_s2, 4  ;;  %s157_s21 = int_to_ptr.vmem [resolvable:$true] %s156_s21 }
   0x6   :  { %v136_v5 = vsel %vm23_vm0, %v134_v3, 0.0  ;;  %v137_v6 = vsel %vm23_vm0, %v135_v4, 0.0  ;;  %s192_s22 = scalar_lea.vmem %s157_s21, 128  ;;  %p197_p1 = scmp.lt.s32.totalorder %s157_s21, %s157_s21 }
   0x7   :  { %v138_v7 = vadd.f32 %v137_v6, %v136_v5  ;;  %p193_p0 = scmp.ne.s32.totalorder %s157_s21, %s192_s22  ;;  %p198_p2 = scmp.lt.s32.totalorder %s192_s22, %s192_s22 }
   0x9   :  { %139 = vst.msk [vmem:[#allocation4] sm:$0xff] %vm23_vm0, %v138_v7  ;;  %p199_p3 = por %p198_p2, %p197_p1 }
   0xb   :  { %p200_p4 = pnand %p199_p3, %p193_p0 }
   0xd   :  { %203 = shalt.err (!%p200_p4)
}
   0xe   :  { %s204_s24 = scalar_lea.hbm %s310_s4, 128 }
   0xf   :  { %p205_p5 = scmp.ne.s32.totalorder %s310_s4, %s204_s24  ;;  %p208_p6 = scmp.lt.u32.totalorder %s204_s24, %s310_s4 }
  0x11   :  { %p210_p7 = pnand %p208_p6, %p205_p5 }
  0x13   :  { %213 = shalt.err (!%p210_p7)
}
  0x14   :  { %159 = dma.vmem_to_hbm [thread:$0]  %s157_s21, 128, %s310_s4, [#allocation5]   ;;  %v22_v16 = vld [vmem:[%s306_s0 + $0x8] sm:$0xff]  ;;  %v21_v17 = vld [vmem:[%s306_s0] sm:$0xff]  ;;  %vm129_vm3 = vcmask 130048  }
  0x15   :  { %vm126_vm1 = vcmp.ne.f32.partialorder %v22_v16, -1.0  ;;  %vm125_vm2 = vcmp.ne.f32.partialorder %v21_v17, -1.0  ;;  %s241_s4 = smov [#allocation2]  }
  0x16   :  { %s146_s9 = sshll.u32 %s241_s4, 4  ;;  %s147_s9 = int_to_ptr.vmem [resolvable:$true] %s146_s9 }
  0x17   :  { %s214_s0 = scalar_lea.vmem %s147_s9, 128  ;;  %p219_p9 = scmp.lt.s32.totalorder %s147_s9, %s147_s9 }
  0x18   :  { %p215_p8 = scmp.ne.s32.totalorder %s147_s9, %s214_s0  ;;  %p220_p10 = scmp.lt.s32.totalorder %s214_s0, %s214_s0 }
  0x1a   :  { %p221_p11 = por %p220_p10, %p219_p9 }
  0x1c   :  { %p222_p12 = pnand %p221_p11, %p215_p8 }
  0xd8   :  { %v181_v8 = vpop.f32.mrb[0].mxu0 }
  0xd9   :  { %v171_v9 = vmul.f32 -1.442695, %v181_v8  ;;  %v96_v10 = vpop.f32.mrb[1].mxu0 }
  0xda   :  { %v170_v11 = vmul.f32 -1.442695, %v96_v10 }
  0xdb   :  { %184 = vpow2.f32 %v171_v9 }
  0xdc   :  { %186 = vpow2.f32 %v170_v11 }
  0xe5   :  { %v185_v12 = vpop.eup %184 }
  0xe6   :  { %v187_v13 = vpop.eup %186  ;;  %v112_v14 = vadd.f32 1.0, %v185_v12 }
  0xe7   :  { %v111_v15 = vadd.f32 1.0, %v187_v13 }
  0xe8   :  { %188 = vrcp.f32 %v112_v14 }
  0xe9   :  { %190 = vrcp.f32 %v111_v15 }
  0xf2   :  { %v189_v18 = vpop.eup %188 }
  0xf3   :  { %v191_v19 = vpop.eup %190  ;;  %v118_v20 = vsub.f32 %v22_v16, %v189_v18 }
  0xf4   :  { %v117_v21 = vsub.f32 %v21_v17, %v191_v19 }
  0xf5   :  { %v120_v22 = vmul.f32 %v118_v20, %v118_v20 }
  0xf6   :  { %v119_v23 = vmul.f32 %v117_v21, %v117_v21 }
  0xf7   :  { %v122_v24 = vmul.f32 -0.5, %v120_v22 }
  0xf8   :  { %v121_v25 = vmul.f32 -0.5, %v119_v23 }
  0xf9   :  { %v173_v26 = vadd.f32 -0.9189385, %v122_v24 }
  0xfa   :  { %v172_v27 = vadd.f32 -0.9189385, %v121_v25 }
  0xfb   :  { %v128_v28 = vsel %vm126_vm1, %v173_v26, 0.0 }
  0xfc   :  { %v127_v29 = vsel %vm125_vm2, %v172_v27, 0.0  ;;  %v131_v30 = vsel %vm129_vm3, %v128_v28, 0.0 }
  0xfd   :  { %v130_v31 = vsel %vm129_vm3, %v127_v29, 0.0 }
  0xfe   :  { %v132_v32 = vadd.f32 %v131_v30, %v130_v31 }
 0x100   :  { %133 = vst.msk [vmem:[#allocation2] sm:$0xff] %vm129_vm3, %v132_v32 }
 0x101   :  { %225 = shalt.err (!%p222_p12)
}
 0x102   :  { %s226_s12 = scalar_lea.hbm %s309_s3, 128 }
 0x103   :  { %p227_p13 = scmp.ne.s32.totalorder %s309_s3, %s226_s12  ;;  %p230_p0 = scmp.lt.u32.totalorder %s226_s12, %s309_s3 }
 0x105   :  { %p232_p1 = pnand %p230_p0, %p227_p13 }
 0x107   :  { %235 = shalt.err (!%p232_p1)
}
 0x108   :  { %149 = dma.vmem_to_hbm [thread:$0]  %s147_s9, 128, %s309_s3, [#allocation3]  }
 0x109   :  { %236 = dma.done.wait [#allocation3], 128  }
 0x10a   :  { %237 = vsyncadd [#allocation3], 4294967168 }
 0x10b   :  { %238 = dma.done.wait [#allocation5], 128  }
 0x10c   :  { %239 = vsyncadd [#allocation5], 4294967168 }
 0x10d   :  { %166 = vsyncpa [#allocation3], 1 }
 0x10e   :  { %167 = vsyncpa [#allocation5], 1 }

</bundles_post_ra>
